<compile_context>
chip_gen: v7x
topology: tpu7x:2x2x1
jax: 0.10.0
libtpu: 0.0.40
codegen_flags: <defaults>
</compile_context>

<pallas_src>
import jax
import jax.numpy as jnp
from jax.experimental import pallas as pl
from jax.experimental.pallas import tpu as pltpu

C_LOCAL = 256            # channels of x_local
C_COND = 256             # channels of c
C_IN = C_LOCAL + C_COND  # 512
H1 = 64
H2 = 64


def _localinfo_kernel(xa_ref, xc_ref, w1_ref, w2_ref, w3_ref, o_ref):
    # xa_ref, xc_ref: (1, 256, TL)   channel-major activation tiles
    # w1_ref: (64, 512)  packed [W1_local | W1_cond]
    # w2_ref: (64, 64)
    # w3_ref: (64, 1)    column vector of the final 64->1 layer
    # o_ref : (1, 1, TL) lane-dense output tile
    xa = xa_ref[0]                     # (256, TL)
    xc = xc_ref[0]                     # (256, TL)
    w1a = w1_ref[:, :C_LOCAL]          # (64, 256)
    w1c = w1_ref[:, C_LOCAL:]          # (64, 256)

    # Layer 1: fused "concat" via two matmuls accumulated in f32.
    h1 = jnp.maximum(
        jnp.dot(w1a, xa, preferred_element_type=jnp.float32)
        + jnp.dot(w1c, xc, preferred_element_type=jnp.float32),
        0.0)                                                     # (64, TL)

    # Layer 2: 64x64 matmul on the MXU.
    h2 = jnp.maximum(
        jnp.dot(w2_ref[...], h1, preferred_element_type=jnp.float32),
        0.0)                                                     # (64, TL)

    # Layer 3 (64 -> 1): VPU scale + XLU sublane reduce (lane-dense result,
    # avoids an N=1 MXU matmul + relayout before the store).
    out = jnp.maximum(
        jnp.sum(h2 * w3_ref[...], axis=0, keepdims=True), 0.0)   # (1, TL)

    o_ref[0] = out.astype(o_ref.dtype)


def localinfoloss_forward(x_local, c, w1, w2, w3, *, tl_max=1024):
    """x_local, c: (B, 256, L) float32 (NCL).  w1/w2/w3: PyTorch Conv1d
    weights with shapes (64,512,1), (64,64,1), (1,64,1).  Returns (B, L)."""
    B, cl, L = x_local.shape
    assert cl == C_LOCAL and c.shape == (B, C_COND, L)

    # Conv weights (out, in, 1) -> matmul form (out, in); w3 as a column.
    w1m = w1[:, :, 0]                       # (64, 512)
    w2m = w2[:, :, 0]                       # (64, 64)
    w3m = jnp.transpose(w3[:, :, 0])        # (64, 1)

    # Lane tile: full L when it fits (always legal as "full array dim"),
    # otherwise a 128-multiple tile; partial tail tiles are masked by Pallas.
    tl = L if L <= tl_max else tl_max
    grid = (B, pl.cdiv(L, tl))

    flops = 2 * B * L * (C_IN * H1 + H1 * H2 + H2)
    bytes_accessed = (B * L * C_IN + B * L
                      + C_IN * H1 + H1 * H2 + H2) * 4

    out = pl.pallas_call(
        _localinfo_kernel,
        out_shape=jax.ShapeDtypeStruct((B, 1, L), jnp.float32),
        grid_spec=pltpu.PrefetchScalarGridSpec(
            num_scalar_prefetch=0,
            grid=grid,
            in_specs=[
                pl.BlockSpec((1, C_LOCAL, tl), lambda b, l: (b, 0, l)),
                pl.BlockSpec((1, C_COND, tl), lambda b, l: (b, 0, l)),
                pl.BlockSpec((H1, C_IN), lambda b, l: (0, 0)),   # resident
                pl.BlockSpec((H2, H1), lambda b, l: (0, 0)),     # resident
                pl.BlockSpec((H2, 1), lambda b, l: (0, 0)),      # resident
            ],
            out_specs=pl.BlockSpec((1, 1, tl), lambda b, l: (b, 0, l)),
        ),
        compiler_params=pltpu.CompilerParams(
            dimension_semantics=("parallel", "parallel")),
        cost_estimate=pl.CostEstimate(
            flops=flops, transcendentals=0, bytes_accessed=bytes_accessed),
    )(x_local, c, w1m, w2m, w3m)

    return out.reshape(B, L)


def _reference_forward(x_local, c, w1, w2, w3):
    """Pure-JAX reference mirroring the PyTorch forward (NCL conv1d 1x1)."""
    xx = jnp.concatenate([x_local, c], axis=1)                    # (B, 512, L)
    h = jax.nn.relu(jnp.einsum("oi,bil->bol", w1[:, :, 0], xx))   # (B, 64, L)
    h = jax.nn.relu(jnp.einsum("oi,bil->bol", w2[:, :, 0], h))    # (B, 64, L)
    h = jax.nn.relu(jnp.einsum("oi,bil->bol", w3[:, :, 0], h))    # (B, 1, L)
    return h.reshape(h.shape[0], -1)                              # (B, L)


if __name__ == "__main__":
    key = jax.random.PRNGKey(0)
    k_x, k_c, k_w1, k_w2, k_w3 = jax.random.split(key, 5)

    B, L = 2, 8  # small batch / sequence; channel sizes fixed by the module
    x_local = jax.random.normal(k_x, (B, C_LOCAL, L), dtype=jnp.float32)
    c = jax.random.normal(k_c, (B, C_COND, L), dtype=jnp.float32)

    # PyTorch Conv1d weight layout: (out_channels, in_channels, 1), bias=False.
    w1 = jax.random.normal(k_w1, (H1, C_IN, 1), dtype=jnp.float32) * 0.05
    w2 = jax.random.normal(k_w2, (H2, H1, 1), dtype=jnp.float32) * 0.1
    w3 = jax.random.normal(k_w3, (1, H2, 1), dtype=jnp.float32) * 0.1

    out = localinfoloss_forward(x_local, c, w1, w2, w3)
    out = jax.block_until_ready(out)

    ref = _reference_forward(x_local, c, w1, w2, w3)
    assert out.shape == (B, L), out.shape
    assert jnp.allclose(out, ref, atol=1e-4, rtol=1e-4), "mismatch vs reference"

    print("KERNEL_OK")
</pallas_src>

<mosaic_0001>
module attributes {stable_mosaic.version = 11 : i64} {
  func.func @_localinfo_kernel(%arg0: i32, %arg1: i32, %arg2: memref<1x256x8xf32, #tpu.memory_space<vmem>>, %arg3: memref<1x256x8xf32, #tpu.memory_space<vmem>>, %arg4: memref<64x512xf32, #tpu.memory_space<vmem>>, %arg5: memref<64x64xf32, #tpu.memory_space<vmem>>, %arg6: memref<64x1xf32, #tpu.memory_space<vmem>>, %arg7: memref<1x1x8xf32, #tpu.memory_space<vmem>>) attributes {dimension_semantics = [#tpu.dimension_semantics<parallel>, #tpu.dimension_semantics<parallel>], iteration_bounds = array<i64: 2, 1>, scalar_prefetch = 0 : i64, scratch_operands = 0 : i64, tpu.core_type = #tpu.core_type<tc>, window_params = [{transform_indices = @transform_0, window_bounds = array<i64: 1, 256, 8>}, {transform_indices = @transform_1, window_bounds = array<i64: 1, 256, 8>}, {pipeline_mode = #tpu.pipeline_mode<synchronous>, transform_indices = @transform_2, window_bounds = array<i64: 64, 512>}, {pipeline_mode = #tpu.pipeline_mode<synchronous>, transform_indices = @transform_3, window_bounds = array<i64: 64, 64>}, {pipeline_mode = #tpu.pipeline_mode<synchronous>, transform_indices = @transform_4, window_bounds = array<i64: 64, 1>}, {transform_indices = @transform_5, window_bounds = array<i64: 1, 1, 8>}]} {
    %c0 = arith.constant 0 : index
    %c0_0 = arith.constant 0 : index
    %c0_1 = arith.constant 0 : index
    %0 = vector.load %arg2[%c0, %c0_0, %c0_1] : memref<1x256x8xf32, #tpu.memory_space<vmem>>, vector<1x256x8xf32>
    %1 = vector.shape_cast %0 : vector<1x256x8xf32> to vector<256x8xf32>
    %c0_2 = arith.constant 0 : index
    %c0_3 = arith.constant 0 : index
    %c0_4 = arith.constant 0 : index
    %2 = vector.load %arg3[%c0_2, %c0_3, %c0_4] : memref<1x256x8xf32, #tpu.memory_space<vmem>>, vector<1x256x8xf32>
    %3 = vector.shape_cast %2 : vector<1x256x8xf32> to vector<256x8xf32>
    %c0_5 = arith.constant 0 : index
    %c0_6 = arith.constant 0 : index
    %4 = vector.load %arg4[%c0_5, %c0_6] : memref<64x512xf32, #tpu.memory_space<vmem>>, vector<64x256xf32>
    %c0_7 = arith.constant 0 : index
    %c256 = arith.constant 256 : index
    %5 = vector.load %arg4[%c0_7, %c256] : memref<64x512xf32, #tpu.memory_space<vmem>>, vector<64x256xf32>
    %cst = arith.constant dense<0.000000e+00> : vector<64x8xf32>
    %6 = tpu.matmul %4, %1, %cst {dimension_numbers = #tpu.dot_dimension_numbers<[1], [0], [0], [1], [0, 0, 1, 1], [], []>} : vector<64x256xf32>, vector<256x8xf32>, vector<64x8xf32> -> vector<64x8xf32>
    %cst_8 = arith.constant dense<0.000000e+00> : vector<64x8xf32>
    %7 = tpu.matmul %5, %3, %cst_8 {dimension_numbers = #tpu.dot_dimension_numbers<[1], [0], [0], [1], [0, 0, 1, 1], [], []>} : vector<64x256xf32>, vector<256x8xf32>, vector<64x8xf32> -> vector<64x8xf32>
    %8 = arith.addf %6, %7 : vector<64x8xf32>
    %cst_9 = arith.constant 0.000000e+00 : f32
    %9 = vector.broadcast %cst_9 : f32 to vector<64x8xf32>
    %10 = arith.maximumf %8, %9 : vector<64x8xf32>
    %c0_10 = arith.constant 0 : index
    %c0_11 = arith.constant 0 : index
    %11 = vector.load %arg5[%c0_10, %c0_11] : memref<64x64xf32, #tpu.memory_space<vmem>>, vector<64x64xf32>
    %cst_12 = arith.constant dense<0.000000e+00> : vector<64x8xf32>
    %12 = tpu.matmul %11, %10, %cst_12 {dimension_numbers = #tpu.dot_dimension_numbers<[1], [0], [0], [1], [0, 0, 1, 1], [], []>} : vector<64x64xf32>, vector<64x8xf32>, vector<64x8xf32> -> vector<64x8xf32>
    %cst_13 = arith.constant 0.000000e+00 : f32
    %13 = vector.broadcast %cst_13 : f32 to vector<64x8xf32>
    %14 = arith.maximumf %12, %13 : vector<64x8xf32>
    %c0_14 = arith.constant 0 : index
    %c0_15 = arith.constant 0 : index
    %15 = vector.load %arg6[%c0_14, %c0_15] : memref<64x1xf32, #tpu.memory_space<vmem>>, vector<64x1xf32>
    %16 = vector.broadcast %15 : vector<64x1xf32> to vector<64x8xf32>
    %17 = arith.mulf %14, %16 : vector<64x8xf32>
    %cst_16 = arith.constant dense<0.000000e+00> : vector<8xf32>
    %18 = vector.multi_reduction <add>, %17, %cst_16 [0] : vector<64x8xf32> to vector<8xf32>
    %19 = vector.shape_cast %18 : vector<8xf32> to vector<1x8xf32>
    %cst_17 = arith.constant 0.000000e+00 : f32
    %20 = vector.broadcast %cst_17 : f32 to vector<1x8xf32>
    %21 = arith.maximumf %19, %20 : vector<1x8xf32>
    %c0_18 = arith.constant 0 : index
    %c0_19 = arith.constant 0 : index
    %c0_20 = arith.constant 0 : index
    %22 = vector.load %arg7[%c0_18, %c0_19, %c0_20] : memref<1x1x8xf32, #tpu.memory_space<vmem>>, vector<1x1x8xf32>
    %23 = vector.shape_cast %22 : vector<1x1x8xf32> to vector<1x8xf32>
    %24 = vector.shape_cast %21 : vector<1x8xf32> to vector<1x1x8xf32>
    tpu.vector_store %arg7[%c0_18, %c0_19, %c0_20], %24 {strides = array<i32>} : memref<1x1x8xf32, #tpu.memory_space<vmem>>, vector<1x1x8xf32>,
    return
  }
  func.func @transform_0(%arg0: i32, %arg1: i32) -> (i32, i32, i32) {
    %c0_i32 = arith.constant 0 : i32
    %c0_i32_0 = arith.constant 0 : i32
    return %arg0, %c0_i32, %arg1 : i32, i32, i32
  }
  func.func @transform_1(%arg0: i32, %arg1: i32) -> (i32, i32, i32) {
    %c0_i32 = arith.constant 0 : i32
    %c0_i32_0 = arith.constant 0 : i32
    return %arg0, %c0_i32, %arg1 : i32, i32, i32
  }
  func.func @transform_2(%arg0: i32, %arg1: i32) -> (i32, i32) {
    %c0_i32 = arith.constant 0 : i32
    %c0_i32_0 = arith.constant 0 : i32
    %c0_i32_1 = arith.constant 0 : i32
    return %c0_i32, %c0_i32_0 : i32, i32
  }
  func.func @transform_3(%arg0: i32, %arg1: i32) -> (i32, i32) {
    %c0_i32 = arith.constant 0 : i32
    %c0_i32_0 = arith.constant 0 : i32
    %c0_i32_1 = arith.constant 0 : i32
    return %c0_i32, %c0_i32_0 : i32, i32
  }
  func.func @transform_4(%arg0: i32, %arg1: i32) -> (i32, i32) {
    %c0_i32 = arith.constant 0 : i32
    %c0_i32_0 = arith.constant 0 : i32
    %c0_i32_1 = arith.constant 0 : i32
    return %c0_i32, %c0_i32_0 : i32, i32
  }
  func.func @transform_5(%arg0: i32, %arg1: i32) -> (i32, i32, i32) {
    %c0_i32 = arith.constant 0 : i32
    %c0_i32_0 = arith.constant 0 : i32
    return %arg0, %c0_i32, %arg1 : i32, i32, i32
  }
}

</mosaic_0001>

<bundles_post_ra>
// kernel: tpu_custom_call.1
= control target key start
LH: loop header
LB: loop body
LE: loop exit
PB: predicated region body
PF: predicated region fallthrough
CT: control target
= control target key end

     0   :  { %10 = vsyncpa [#allocation3], 0  ;;  %s1700_s0 = inlined_call_operand.vmem [shape: f32[2,256,8], index: 0, kind: input, shape index: {}]   ;;  %s1701_s1 = inlined_call_operand.vmem [shape: f32[2,256,8], index: 1, kind: input, shape index: {}]   ;;  %s1702_s2 = inlined_call_operand.vmem [shape: f32[64,512], index: 2, kind: input, shape index: {}]   ;;  %s1703_s3 = inlined_call_operand.vmem [shape: f32[64,64], index: 3, kind: input, shape index: {}]   ;;  %s1704_s4 = inlined_call_operand.vmem [shape: f32[64,1], index: 4, kind: input, shape index: {}]   ;;  %s1705_s5 = inlined_call_operand.hbm [shape: f32[2,1,8], index: 5, kind: output, shape index: {}]  }
   0x1   :  { %12 = vsyncpa [#allocation3 + $0x1], 0  ;;  %s1357_s18 = smov 0   ;;  %s1359_s19 = smov 0  }
   0x2   :  { %s1361_s20 = smov 0   ;;  %s1363_s21 = smov 0  }
   0x3   :  { %s1365_s22 = smov 0   ;;  %s1367_s23 = smov 0  }
   0x4 LB: > { %s921_s24 = sadd.s32 4294967295, %s1323_s23   ;;  %s922_s25 = sadd.s32 4294967294, %s1323_s23   ;;  %s1323_s23 = sphi %s1367_s23, %s18_s23   ;;  %s1319_s22 = sphi %s1365_s22, %s1712_s22   ;;  %s1315_s21 = sphi %s1363_s21, %s1711_s21   ;;  %s1311_s20 = sphi %s1361_s20, %s1710_s20   ;;  %s1307_s19 = sphi %s1359_s19, %s1709_s19   ;;  %s1303_s18 = sphi %s1357_s18, %s1708_s18  }
   0x5   : > { %s30_s26 = sadd.s32 1, %s1319_s22  ;;  %s158_s27 = sadd.s32 1, %s1311_s20 }
   0x6   : > { %p32_p0 = scmp.ge.s32.totalorder %s30_s26, 2  ;;  %p168_p1 = scmp.ne.s32.totalorder %s1311_s20, %s1307_s19 }
   0x7   : > { %p169_p2 = scmp.eq.s32.totalorder %s921_s24, 1  ;;  %p174_p3 = scmp.ne.s32.totalorder %s1307_s19, %s1303_s18 }
   0x8   : > { %s1714_s26 = smov (%p32_p0, %s30_s26), 0  ;;  %p175_p5 = scmp.eq.s32.totalorder %s922_s25, 1 }
   0x9   : > { %p1397_p4 = por %p169_p2, %p168_p1  ;;  %s153_s29 = ssub.s32 %s1319_s22, %s1714_s26 }
   0xa   : > { %p925_p6 = scmp.ge.s32.totalorder %s1323_s23, 1  ;;  %p156_p7 = scmp.eq.s32.totalorder %s153_s29, 0 }
   0xb   : > { %p1404_p8 = por %p175_p5, %p174_p3  ;;  %p224_p9 = scmp.lt.s32.totalorder %s1323_s23, 3 }
   0xc   : > { %s1410_s6 = scalar_select %p156_p7, %s1311_s20, %s158_s27  }
   0xd   : > { %p225_p10 = pnand %p925_p6, %p224_p9 }
   0xe   : > { %p262_p11 = scmp.lt.s32.totalorder (!%p225_p10), %s1315_s21, 1  ;;  %v359_v0 = vld [vmem:[%s1702_s2 + $0x18] sm:$0xff] (!%p225_p10)  ;;  %v343_v1 = vld [vmem:[%s1702_s2 + $0x8] sm:$0xff] (!%p225_p10)  ;;  %vm600_vm0 = vcmask (!%p225_p10), 523264   ;;  %vm794_vm1 = vcmask (!%p225_p10), 64512   ;;  %s260_s29 = sand.u32 (!%p225_p10), 1, %s1307_s19  }
   0xf   : > { %228 = sbr.rel (%p225_p10) target bundleno = 578 (0x242), region = 40  ;;  %438 = vmatprep.mubr.f32.mxu0 (!%p225_p10), %v359_v0  ;;  %543 = vmatprep.mubr.f32.mxu1 (!%p225_p10), %v343_v1  ;;  %s938_s7 = sshll.u32 (!%p225_p10), %s1315_s21, 4  ;;  %vm817_vm2 = vcmask (!%p225_p10), 57344  }
  0x10   : > { %s261_s8 = scalar_lea.vmem (!%p225_p10), [#allocation2], %s260_s29  ;;  %s820_s13 = scalar_lea.sflag (!%p225_p10), [#allocation3], %s260_s29 }
  0x11   : > { %s833_s9 = sshll.u32 (!%p225_p10), %s261_s8, 4  ;;  %s1655_s9 = int_to_ptr.vmem [resolvable:$true] %s833_s9 }
  0x12   : > { %s1245_s14 = scalar_lea.vmem (!%p225_p10), %s1655_s9, 16 }
  0x13   : > { %p1246_p12 = scmp.ne.s32.totalorder (!%p225_p10), %s1655_s9, %s1245_s14 }
  0x15   : > { %p1247_p13 = pnand (!%p225_p10), %p1246_p12, %p1397_p4 }
  0x16   : > { %s263_s11 = scalar_select %p262_p11, %s1315_s21, 1 }
  0x17   : > { %p1248_p0 = pneg %p1247_p13  ;;  %s1326_s21 = smov [#allocation2]  }
  0x18   : > { %s941_s12 = sshll.u32 %s263_s11, 8 }
  0x19   : > { %s1423_s15 = scalar_lea.vmem %s1701_s1, %s941_s12  ;;  %s1428_s24 = scalar_lea.vmem %s1700_s0, %s941_s12 }
  0x1a   : > { %v326_v2 = vld [vmem:[%s1423_s15 + $0x80] sm:$0xff]  ;;  %v327_v3 = vld [vmem:[%s1423_s15 + $0x88] sm:$0xff]  ;;  %v328_v13 = vld [vmem:[%s1423_s15 + $0x90] sm:$0xff]  ;;  %s1653_s12 = scalar_lea.hbm %s1705_s5, %s938_s7 }
  0x1b   : > { %v294_v4 = vld [vmem:[%s1428_s24 + $0x80] sm:$0xff]  ;;  %v1099_v5 = vpack.c.bf16 %v327_v3, %v326_v2  ;;  %v295_v6 = vld [vmem:[%s1428_s24 + $0x88] sm:$0xff]  ;;  %v329_v15 = vld [vmem:[%s1423_s15 + $0x98] sm:$0xff] }
  0x1c   : > { %v310_v7 = vld [vmem:[%s1423_s15] sm:$0xff]  ;;  %v311_v8 = vld [vmem:[%s1423_s15 + $0x8] sm:$0xff]  ;;  %v1131_v9 = vpack.c.bf16 %v295_v6, %v294_v4  ;;  %v296_v16 = vld [vmem:[%s1428_s24 + $0x90] sm:$0xff]  ;;  %v1103_v18 = vpack.c.bf16 %v329_v15, %v328_v13 }
  0x1d   : > { %v1101_v10 = vpack.c.bf16 %v311_v8, %v310_v7  ;;  %v278_v11 = vld [vmem:[%s1428_s24] sm:$0xff]  ;;  %v279_v12 = vld [vmem:[%s1428_s24 + $0x8] sm:$0xff]  ;;  %1100 = vmatprep.subr.bf16.mxu0 %v1099_v5  ;;  %v297_v17 = vld [vmem:[%s1428_s24 + $0x98] sm:$0xff] }
  0x1e   : > { %v1133_v14 = vpack.c.bf16 %v279_v12, %v278_v11  ;;  %1132 = vmatprep.subr.bf16.mxu1 %v1131_v9  ;;  %v1135_v19 = vpack.c.bf16 %v297_v17, %v296_v16  ;;  %v312_v20 = vld [vmem:[%s1423_s15 + $0x10] sm:$0xff]  ;;  %v313_v21 = vld [vmem:[%s1423_s15 + $0x18] sm:$0xff]  ;;  %v330_v25 = vld [vmem:[%s1423_s15 + $0xa0] sm:$0xff] }
  0x1f   : > { %1102 = vmatpush3.bf16.msra.mxu0 %v1101_v10  ;;  %v280_v22 = vld [vmem:[%s1428_s24 + $0x10] sm:$0xff]  ;;  %v1105_v23 = vpack.c.bf16 %v313_v21, %v312_v20  ;;  %v281_v24 = vld [vmem:[%s1428_s24 + $0x18] sm:$0xff]  ;;  %v331_v26 = vld [vmem:[%s1423_s15 + $0xa8] sm:$0xff] }
  0x20   : > { %1134 = vmatpush3.bf16.msra.mxu1 %v1133_v14  ;;  %1104 = vmatprep.subr.bf16.mxu0 %v1103_v18  ;;  %v1137_v27 = vpack.c.bf16 %v281_v24, %v280_v22  ;;  %v1107_v28 = vpack.c.bf16 %v331_v26, %v330_v25  ;;  %v298_v29 = vld [vmem:[%s1428_s24 + $0xa0] sm:$0xff]  ;;  %v299_v30 = vld [vmem:[%s1428_s24 + $0xa8] sm:$0xff]  ;;  %v332_v37 = vld [vmem:[%s1423_s15 + $0xb0] sm:$0xff] }
  0x21   : > { %1136 = vmatprep.subr.bf16.mxu1 %v1135_v19  ;;  %v314_v31 = vld [vmem:[%s1423_s15 + $0x20] sm:$0xff]  ;;  %v1139_v32 = vpack.c.bf16 %v299_v30, %v298_v29  ;;  %v315_v33 = vld [vmem:[%s1423_s15 + $0x28] sm:$0xff]  ;;  %v333_v38 = vld [vmem:[%s1423_s15 + $0xb8] sm:$0xff] }
  0x22   : > { %v282_v34 = vld [vmem:[%s1428_s24 + $0x20] sm:$0xff]  ;;  %v283_v35 = vld [vmem:[%s1428_s24 + $0x28] sm:$0xff]  ;;  %v1109_v36 = vpack.c.bf16 %v315_v33, %v314_v31  ;;  %v300_v39 = vld [vmem:[%s1428_s24 + $0xb0] sm:$0xff]  ;;  %v1111_v41 = vpack.c.bf16 %v333_v38, %v332_v37 }
  0x23   : > { %1106 = vmatpush3.bf16.msra.mxu0 %v1105_v23  ;;  %v1141_v40 = vpack.c.bf16 %v283_v35, %v282_v34  ;;  %v301_v42 = vld [vmem:[%s1428_s24 + $0xb8] sm:$0xff]  ;;  %v316_v43 = vld [vmem:[%s1423_s15 + $0x30] sm:$0xff]  ;;  %v334_v48 = vld [vmem:[%s1423_s15 + $0xc0] sm:$0xff] }
  0x24   : > { %1138 = vmatpush3.bf16.msra.mxu1 %v1137_v27  ;;  %1108 = vmatprep.subr.bf16.mxu0 %v1107_v28  ;;  %v317_v44 = vld [vmem:[%s1423_s15 + $0x38] sm:$0xff]  ;;  %v1143_v45 = vpack.c.bf16 %v301_v42, %v300_v39  ;;  %v284_v46 = vld [vmem:[%s1428_s24 + $0x30] sm:$0xff]  ;;  %v335_v49 = vld [vmem:[%s1423_s15 + $0xc8] sm:$0xff] }
  0x25   : > { %1140 = vmatprep.subr.bf16.mxu1 %v1139_v32  ;;  %v285_v47 = vld [vmem:[%s1428_s24 + $0x38] sm:$0xff]  ;;  %v302_v50 = vld [vmem:[%s1428_s24 + $0xc0] sm:$0xff]  ;;  %v303_v51 = vld [vmem:[%s1428_s24 + $0xc8] sm:$0xff]  ;;  %v1113_v52 = vpack.c.bf16 %v317_v44, %v316_v43  ;;  %v1115_v54 = vpack.c.bf16 %v335_v49, %v334_v48 }
  0x26   : > { %v1145_v53 = vpack.c.bf16 %v285_v47, %v284_v46  ;;  %v318_v55 = vld [vmem:[%s1423_s15 + $0x40] sm:$0xff]  ;;  %v319_v56 = vld [vmem:[%s1423_s15 + $0x48] sm:$0xff]  ;;  %v1147_v58 = vpack.c.bf16 %v303_v51, %v302_v50  ;;  %v336_v60 = vld [vmem:[%s1423_s15 + $0xd0] sm:$0xff] }
  0x27   : > { %1110 = vmatpush3.bf16.msra.mxu0 %v1109_v36  ;;  %v286_v57 = vld [vmem:[%s1428_s24 + $0x40] sm:$0xff]  ;;  %v287_v59 = vld [vmem:[%s1428_s24 + $0x48] sm:$0xff]  ;;  %v337_v61 = vld [vmem:[%s1423_s15 + $0xd8] sm:$0xff]  ;;  %v1117_v0 = vpack.c.bf16 %v319_v56, %v318_v55 }
  0x28   : > { %1142 = vmatpush3.bf16.msra.mxu1 %v1141_v40  ;;  %1112 = vmatprep.subr.bf16.mxu0 %v1111_v41  ;;  %v304_v62 = vld [vmem:[%s1428_s24 + $0xd0] sm:$0xff]  ;;  %v305_v63 = vld [vmem:[%s1428_s24 + $0xd8] sm:$0xff]  ;;  %v1149_v1 = vpack.c.bf16 %v287_v59, %v286_v57  ;;  %v1119_v2 = vpack.c.bf16 %v337_v61, %v336_v60  ;;  %v338_v8 = vld [vmem:[%s1423_s15 + $0xe0] sm:$0xff] }
  0x29   : > { %1144 = vmatprep.subr.bf16.mxu1 %v1143_v45  ;;  %v320_v3 = vld [vmem:[%s1423_s15 + $0x50] sm:$0xff]  ;;  %v321_v4 = vld [vmem:[%s1423_s15 + $0x58] sm:$0xff]  ;;  %v1151_v6 = vpack.c.bf16 %v305_v63, %v304_v62  ;;  %v339_v9 = vld [vmem:[%s1423_s15 + $0xe8] sm:$0xff] }
  0x2a   : > { %v288_v5 = vld [vmem:[%s1428_s24 + $0x50] sm:$0xff]  ;;  %v289_v7 = vld [vmem:[%s1428_s24 + $0x58] sm:$0xff]  ;;  %v306_v10 = vld [vmem:[%s1428_s24 + $0xe0] sm:$0xff]  ;;  %v1121_v12 = vpack.c.bf16 %v321_v4, %v320_v3  ;;  %v1123_v14 = vpack.c.bf16 %v339_v9, %v338_v8  ;;  %v1325_v4 = vmov 0  }
  0x2b   : > { %1114 = vmatpush3.bf16.msra.mxu0 %v1113_v52  ;;  %v307_v11 = vld [vmem:[%s1428_s24 + $0xe8] sm:$0xff]  ;;  %v1153_v13 = vpack.c.bf16 %v289_v7, %v288_v5  ;;  %v322_v15 = vld [vmem:[%s1423_s15 + $0x60] sm:$0xff]  ;;  %v340_v20 = vld [vmem:[%s1423_s15 + $0xf0] sm:$0xff]  ;;  %1243 = vset.pattern.permute.xlu0 %v1325_v4 }
  0x2c   : > { %1146 = vmatpush3.bf16.msra.mxu1 %v1145_v53  ;;  %1116 = vmatprep.subr.bf16.mxu0 %v1115_v54  ;;  %v323_v16 = vld [vmem:[%s1423_s15 + $0x68] sm:$0xff]  ;;  %v290_v17 = vld [vmem:[%s1428_s24 + $0x60] sm:$0xff]  ;;  %v1155_v18 = vpack.c.bf16 %v307_v11, %v306_v10  ;;  %v341_v21 = vld [vmem:[%s1423_s15 + $0xf8] sm:$0xff] }
  0x2d   : > { %1148 = vmatprep.subr.bf16.mxu1 %v1147_v58  ;;  %v291_v19 = vld [vmem:[%s1428_s24 + $0x68] sm:$0xff]  ;;  %v308_v22 = vld [vmem:[%s1428_s24 + $0xf0] sm:$0xff]  ;;  %v309_v23 = vld [vmem:[%s1428_s24 + $0xf8] sm:$0xff]  ;;  %v1125_v24 = vpack.c.bf16 %v323_v16, %v322_v15  ;;  %v1127_v26 = vpack.c.bf16 %v341_v21, %v340_v20  ;;  %1244 = vset.pattern.permute.xlu1 %v1325_v4 }
  0x2e   : > { %v1157_v25 = vpack.c.bf16 %v291_v19, %v290_v17  ;;  %v324_v27 = vld [vmem:[%s1423_s15 + $0x70] sm:$0xff]  ;;  %v325_v28 = vld [vmem:[%s1423_s15 + $0x78] sm:$0xff]  ;;  %v1159_v29 = vpack.c.bf16 %v309_v23, %v308_v22  ;;  %v342_v35 = vld [vmem:[%s1702_s2] sm:$0xff]  ;;  %s1249_s15 = sshll.u32 %s1326_s21, 4  ;;  %s1250_s15 = int_to_ptr.vmem [resolvable:$false] %s1249_s15 }
  0x2f   : > { %1118 = vmatpush3.bf16.msra.mxu0 %v1117_v0  ;;  %v292_v30 = vld [vmem:[%s1428_s24 + $0x70] sm:$0xff]  ;;  %v293_v31 = vld [vmem:[%s1428_s24 + $0x78] sm:$0xff]  ;;  %v1129_v32 = vpack.c.bf16 %v325_v28, %v324_v27  ;;  %v345_v37 = vld [vmem:[%s1702_s2 + $0x28] sm:$0xff]  ;;  %s1251_s16 = scalar_lea.vmem %s1250_s15, 32  ;;  %p1252_p1 = scmp.lt.s32.totalorder %s1655_s9, %s1250_s15 }
  0x30   : > { %1150 = vmatpush3.bf16.msra.mxu1 %v1149_v1  ;;  %1120 = vmatprep.subr.bf16.mxu0 %v1119_v2  ;;  %v1161_v33 = vpack.c.bf16 %v293_v31, %v292_v30  ;;  %v358_v34 = vld [vmem:[%s1702_s2 + $0x10] sm:$0xff]  ;;  %v361_v36 = vld [vmem:[%s1702_s2 + $0x38] sm:$0xff]  ;;  %v344_v39 = vld [vmem:[%s1702_s2 + $0x20] sm:$0xff]  ;;  %p1253_p2 = scmp.lt.s32.totalorder %s1251_s16, %s1245_s14 }
  0x31   : > { %1152 = vmatprep.subr.bf16.mxu1 %v1151_v6  ;;  %v360_v38 = vld [vmem:[%s1702_s2 + $0x30] sm:$0xff]  ;;  %v363_v40 = vld [vmem:[%s1702_s2 + $0x58] sm:$0xff]  ;;  %v347_v41 = vld [vmem:[%s1702_s2 + $0x48] sm:$0xff] }
  0x32   : > { %v362_v42 = vld [vmem:[%s1702_s2 + $0x50] sm:$0xff]  ;;  %v346_v43 = vld [vmem:[%s1702_s2 + $0x40] sm:$0xff]  ;;  %v365_v44 = vld [vmem:[%s1702_s2 + $0x78] sm:$0xff]  ;;  %p1254_p3 = por %p1253_p2, %p1252_p1 }
  0x33   : > { %1122 = vmatpush3.bf16.msra.mxu0 %v1121_v12  ;;  %v349_v45 = vld [vmem:[%s1702_s2 + $0x68] sm:$0xff]  ;;  %v364_v46 = vld [vmem:[%s1702_s2 + $0x70] sm:$0xff]  ;;  %v348_v47 = vld [vmem:[%s1702_s2 + $0x60] sm:$0xff] }
  0x34   : > { %1154 = vmatpush3.bf16.msra.mxu1 %v1153_v13  ;;  %1124 = vmatprep.subr.bf16.mxu0 %v1123_v14  ;;  %v367_v48 = vld [vmem:[%s1702_s2 + $0x98] sm:$0xff]  ;;  %v351_v49 = vld [vmem:[%s1702_s2 + $0x88] sm:$0xff]  ;;  %v366_v50 = vld [vmem:[%s1702_s2 + $0x90] sm:$0xff]  ;;  %p1255_p5 = pnand %p1254_p3, %p1248_p0 }
  0x35   : > { %1156 = vmatprep.subr.bf16.mxu1 %v1155_v18  ;;  %v350_v51 = vld [vmem:[%s1702_s2 + $0x80] sm:$0xff]  ;;  %v369_v52 = vld [vmem:[%s1702_s2 + $0xb8] sm:$0xff]  ;;  %v353_v53 = vld [vmem:[%s1702_s2 + $0xa8] sm:$0xff] }
  0x36   : > { %v368_v54 = vld [vmem:[%s1702_s2 + $0xb0] sm:$0xff]  ;;  %v352_v55 = vld [vmem:[%s1702_s2 + $0xa0] sm:$0xff]  ;;  %v371_v56 = vld [vmem:[%s1702_s2 + $0xd8] sm:$0xff] }
  0x37   : > { %1126 = vmatpush3.bf16.msra.mxu0 %v1125_v24  ;;  %v355_v57 = vld [vmem:[%s1702_s2 + $0xc8] sm:$0xff]  ;;  %v370_v58 = vld [vmem:[%s1702_s2 + $0xd0] sm:$0xff]  ;;  %v354_v59 = vld [vmem:[%s1702_s2 + $0xc0] sm:$0xff] }
  0x38   : > { %1158 = vmatpush3.bf16.msra.mxu1 %v1157_v25  ;;  %1128 = vmatprep.subr.bf16.mxu0 %v1127_v26  ;;  %v373_v60 = vld [vmem:[%s1702_s2 + $0xf8] sm:$0xff]  ;;  %v357_v61 = vld [vmem:[%s1702_s2 + $0xe8] sm:$0xff]  ;;  %v372_v62 = vld [vmem:[%s1702_s2 + $0xf0] sm:$0xff] }
  0x39   : > { %1160 = vmatprep.subr.bf16.mxu1 %v1159_v29  ;;  %v356_v63 = vld [vmem:[%s1702_s2 + $0xe0] sm:$0xff]  ;;  %v740_v3 = vld [vmem:[%s1704_s4 + $0x10] sm:$0xff]  ;;  %v739_v5 = vld [vmem:[%s1704_s4 + $0x8] sm:$0xff] }
  0x3a   : > { %v592_v0 = vld [vmem:[%s1703_s3] sm:$0xff]  ;;  %758 = vperm.xlu1 %1244, %v740_v3   ;;  %v741_v6 = vld [vmem:[%s1704_s4 + $0x18] sm:$0xff]  ;;  %v743_v8 = vld [vmem:[%s1704_s4 + $0x28] sm:$0xff] }
  0x3b   : > { %1130 = vmatpush3.bf16.msra.mxu0 %v1129_v32  ;;  %v596_v1 = vld [vmem:[%s1703_s3 + $0x20] sm:$0xff]  ;;  %v744_v9 = vld [vmem:[%s1704_s4 + $0x30] sm:$0xff]  ;;  %v745_v10 = vld [vmem:[%s1704_s4 + $0x38] sm:$0xff] }
  0x3c   : > { %1162 = vmatpush3.bf16.msra.mxu1 %v1161_v33  ;;  %v738_v2 = vld [vmem:[%s1704_s4] sm:$0xff] }
  0x3d   : > { %748 = vperm.xlu0 %1243, %v738_v2   ;;  %v742_v7 = vld [vmem:[%s1704_s4 + $0x20] sm:$0xff] }
  0x3e   : > { %439 = vmatmul.mubr.f32.vlgmr.msra.gmra.mrb[0].mxu0 %v358_v34  ;;  %763 = vperm.xlu1 %1244, %v741_v6  }
  0x3f   : > { %544 = vmatmul.mubr.f32.vlgmr.msra.gmra.mrb[0].mxu1 %v342_v35  ;;  %443 = vmatprep.mubr.f32.mxu0 %v361_v36 }
  0x40   : > { %548 = vmatprep.mubr.f32.mxu1 %v345_v37 }
  0x41   : > { %753 = vperm.xlu0 %1243, %v739_v5  }
  0x42   : > { %444 = vmatmul.mubr.f32.gmra.mrb[2].mxu0 %v360_v38  ;;  %773 = vperm.xlu1 %1244, %v743_v8  }
  0x43   : > { %549 = vmatmul.mubr.f32.gmra.mrb[2].mxu1 %v344_v39  ;;  %448 = vmatprep.mubr.f32.mxu0 %v363_v40 }
  0x44   : > { %553 = vmatprep.mubr.f32.mxu1 %v347_v41 }
  0x45   : > { %768 = vperm.xlu0 %1243, %v742_v7  }
  0x46   : > { %449 = vmatmul.mubr.f32.gmra.mrb[4].mxu0 %v362_v42  ;;  %783 = vperm.xlu1 %1244, %v745_v10  }
  0x47   : > { %554 = vmatmul.mubr.f32.gmra.mrb[4].mxu1 %v346_v43  ;;  %453 = vmatprep.mubr.f32.mxu0 %v365_v44 }
  0x48   : > { %558 = vmatprep.mubr.f32.mxu1 %v349_v45 }
  0x49   : > { %778 = vperm.xlu0 %1243, %v744_v9  }
  0x4a   : > { %454 = vmatmul.mubr.f32.gmra.mrb[6].mxu0 %v364_v46 }
  0x4b   : > { %559 = vmatmul.mubr.f32.gmra.mrb[6].mxu1 %v348_v47  ;;  %458 = vmatprep.mubr.f32.mxu0 %v367_v48 }
  0x4c   : > { %563 = vmatprep.mubr.f32.mxu1 %v351_v49 }
  0x4e   : > { %459 = vmatmul.mubr.f32.gmra.mrb[8].mxu0 %v366_v50 }
  0x4f   : > { %564 = vmatmul.mubr.f32.gmra.mrb[8].mxu1 %v350_v51  ;;  %463 = vmatprep.mubr.f32.mxu0 %v369_v52 }
  0x50   : > { %568 = vmatprep.mubr.f32.mxu1 %v353_v53 }
  0x52   : > { %464 = vmatmul.mubr.f32.gmra.mrb[10].mxu0 %v368_v54 }
  0x53   : > { %569 = vmatmul.mubr.f32.gmra.mrb[10].mxu1 %v352_v55  ;;  %468 = vmatprep.mubr.f32.mxu0 %v371_v56 }
  0x54   : > { %573 = vmatprep.mubr.f32.mxu1 %v355_v57 }
  0x56   : > { %469 = vmatmul.mubr.f32.gmra.mrb[12].mxu0 %v370_v58 }
  0x57   : > { %574 = vmatmul.mubr.f32.gmra.mrb[12].mxu1 %v354_v59  ;;  %473 = vmatprep.mubr.f32.mxu0 %v373_v60 }
  0x58   : > { %578 = vmatprep.mubr.f32.mxu1 %v357_v61 }
  0x5a   : > { %474 = vmatmul.mubr.f32.gmra.mrb[14].mxu0 %v372_v62 }
  0x5b   : > { %579 = vmatmul.mubr.f32.gmra.mrb[14].mxu1 %v356_v63  ;;  %1087 = vmatprep.mubr.msk.f32.mxu0 %vm600_vm0, %v592_v0 }
  0x5c   : > { %1093 = vmatprep.mubr.msk.f32.mxu1 %vm600_vm0, %v596_v1 }
 0x111   : > { %v975_v11 = vpop.f32.mrb[0].mxu0 }
 0x112   : > { %v1031_v12 = vpop.f32.mrb[0].mxu1  ;;  %v976_v13 = vpop.f32.mrb[1].mxu0 }
 0x113   : > { %v977_v14 = vadd.f32 %v976_v13, %v975_v11  ;;  %v1032_v15 = vpop.f32.mrb[1].mxu1 }
 0x114   : > { %v1033_v16 = vadd.f32 %v1032_v15, %v1031_v12  ;;  %v593_v15 = vld [vmem:[%s1703_s3 + $0x8] sm:$0xff] }
 0x115   : > { %v978_v17 = vpop.f32.mrb[2].mxu0 }
 0x116   : > { %v546_v18 = vadd.f32 %v1033_v16, %v977_v14  ;;  %v1034_v19 = vpop.f32.mrb[2].mxu1  ;;  %v979_v20 = vpop.f32.mrb[3].mxu0  ;;  %v597_v16 = vld [vmem:[%s1703_s3 + $0x28] sm:$0xff] }
 0x117   : > { %v980_v21 = vadd.f32 %v979_v20, %v978_v17  ;;  %v1035_v22 = vpop.f32.mrb[3].mxu1  ;;  %v594_v17 = vld [vmem:[%s1703_s3 + $0x10] sm:$0xff]  ;;  %v599_v20 = vld [vmem:[%s1703_s3 + $0x38] sm:$0xff] }
 0x118   : > { %v1036_v23 = vadd.f32 %v1035_v22, %v1034_v19  ;;  %v584_v30 = vmax.f32 %v546_v18, 0.0  ;;  %v598_v18 = vld [vmem:[%s1703_s3 + $0x30] sm:$0xff]  ;;  %v595_v19 = vld [vmem:[%s1703_s3 + $0x18] sm:$0xff]  ;;  %v759_v22 = vpop.permute.xlu1 %758 }
 0x119   : > { %v981_v24 = vpop.f32.mrb[4].mxu0 }
 0x11a   : > { %v551_v25 = vadd.f32 %v1036_v23, %v980_v21  ;;  %v1037_v26 = vpop.f32.mrb[4].mxu1  ;;  %v982_v27 = vpop.f32.mrb[5].mxu0 }
 0x11b   : > { %v983_v28 = vadd.f32 %v982_v27, %v981_v24  ;;  %v1038_v29 = vpop.f32.mrb[5].mxu1  ;;  %v749_v21 = vpop.permute.xlu0 %748 }
 0x11c   : > { %v585_v31 = vmax.f32 %v551_v25, 0.0  ;;  %v1039_v32 = vadd.f32 %v1038_v29, %v1037_v26  ;;  %v764_v24 = vpop.permute.xlu1 %763 }
 0x11d   : > { %v984_v33 = vpop.f32.mrb[6].mxu0 }
 0x11e   : > { %v1163_v34 = vpack.c.bf16 %v585_v31, %v584_v30  ;;  %v556_v35 = vadd.f32 %v1039_v32, %v983_v28  ;;  %v1040_v36 = vpop.f32.mrb[6].mxu1  ;;  %v985_v37 = vpop.f32.mrb[7].mxu0 }
 0x11f   : > { %v986_v38 = vadd.f32 %v985_v37, %v984_v33  ;;  %v1041_v39 = vpop.f32.mrb[7].mxu1  ;;  %v754_v23 = vpop.permute.xlu0 %753 }
 0x120   : > { %v1042_v40 = vadd.f32 %v1041_v39, %v1040_v36  ;;  %1164 = vmatprep.subr.bf16.mxu0 %v1163_v34  ;;  %1179 = vmatprep.subr.bf16.mxu1 %v1163_v34  ;;  %v586_v47 = vmax.f32 %v556_v35, 0.0 }
 0x121   : > { %1166 = vmatpush3.bf16.msra.mxu0 %v1163_v34  ;;  %1183 = vmatpush3.bf16.msra.mxu1 %v1163_v34  ;;  %v987_v41 = vpop.f32.mrb[8].mxu0 }
 0x122   : > { %v561_v42 = vadd.f32 %v1042_v40, %v986_v38  ;;  %v1043_v43 = vpop.f32.mrb[8].mxu1  ;;  %v988_v44 = vpop.f32.mrb[9].mxu0 }
 0x123   : > { %v989_v45 = vadd.f32 %v988_v44, %v987_v41  ;;  %v1044_v46 = vpop.f32.mrb[9].mxu1  ;;  %v774_v44 = vpop.permute.xlu1 %773 }
 0x124   : > { %v587_v48 = vmax.f32 %v561_v42, 0.0  ;;  %v1045_v49 = vadd.f32 %v1044_v46, %v1043_v43  ;;  %v769_v42 = vpop.permute.xlu0 %768 }
 0x125   : > { %v990_v50 = vpop.f32.mrb[10].mxu0 }
 0x126   : > { %v1167_v51 = vpack.c.bf16 %v587_v48, %v586_v47  ;;  %v566_v52 = vadd.f32 %v1045_v49, %v989_v45  ;;  %v1046_v53 = vpop.f32.mrb[10].mxu1  ;;  %v991_v54 = vpop.f32.mrb[11].mxu0 }
 0x127   : > { %v992_v55 = vadd.f32 %v991_v54, %v990_v50  ;;  %v1047_v56 = vpop.f32.mrb[11].mxu1 }
 0x128   : > { %v1048_v57 = vadd.f32 %v1047_v56, %v1046_v53  ;;  %1168 = vmatprep.subr.bf16.mxu0 %v1167_v51  ;;  %1180 = vmatprep.subr.bf16.mxu1 %v1167_v51  ;;  %v588_v0 = vmax.f32 %v566_v52, 0.0  ;;  %v779_v56 = vpop.permute.xlu0 %778 }
 0x129   : > { %1170 = vmatpush3.bf16.msra.mxu0 %v1167_v51  ;;  %1184 = vmatpush3.bf16.msra.mxu1 %v1167_v51  ;;  %v993_v58 = vpop.f32.mrb[12].mxu0 }
 0x12a   : > { %v571_v59 = vadd.f32 %v1048_v57, %v992_v55  ;;  %v1049_v60 = vpop.f32.mrb[12].mxu1  ;;  %v994_v61 = vpop.f32.mrb[13].mxu0 }
 0x12b   : > { %v995_v62 = vadd.f32 %v994_v61, %v993_v58  ;;  %v1050_v63 = vpop.f32.mrb[13].mxu1  ;;  %v784_v57 = vpop.permute.xlu1 %783 }
 0x12c   : > { %v589_v1 = vmax.f32 %v571_v59, 0.0  ;;  %v1051_v2 = vadd.f32 %v1050_v63, %v1049_v60 }
 0x12d   : > { %v996_v3 = vpop.f32.mrb[14].mxu0 }
 0x12e   : > { %v1171_v4 = vpack.c.bf16 %v589_v1, %v588_v0  ;;  %v576_v5 = vadd.f32 %v1051_v2, %v995_v62  ;;  %v1052_v6 = vpop.f32.mrb[14].mxu1  ;;  %v997_v7 = vpop.f32.mrb[15].mxu0 }
 0x12f   : > { %v998_v8 = vadd.f32 %v997_v7, %v996_v3  ;;  %v1053_v9 = vpop.f32.mrb[15].mxu1 }
 0x130   : > { %v1054_v10 = vadd.f32 %v1053_v9, %v1052_v6  ;;  %1172 = vmatprep.subr.bf16.mxu0 %v1171_v4  ;;  %1181 = vmatprep.subr.bf16.mxu1 %v1171_v4  ;;  %v590_v12 = vmax.f32 %v576_v5, 0.0 }
 0x131   : > { %1174 = vmatpush3.bf16.msra.mxu0 %v1171_v4  ;;  %1185 = vmatpush3.bf16.msra.mxu1 %v1171_v4 }
 0x132   : > { %v581_v11 = vadd.f32 %v1054_v10, %v998_v8 }
 0x134   : > { %v591_v13 = vmax.f32 %v581_v11, 0.0 }
 0x136   : > { %v1175_v14 = vpack.c.bf16 %v591_v13, %v590_v12 }
 0x138   : > { %1176 = vmatprep.subr.bf16.mxu0 %v1175_v14  ;;  %1182 = vmatprep.subr.bf16.mxu1 %v1175_v14 }
 0x139   : > { %1178 = vmatpush3.bf16.msra.mxu0 %v1175_v14  ;;  %1186 = vmatpush3.bf16.msra.mxu1 %v1175_v14 }
 0x13c   : > { %1088 = vmatmul.mubr.msk.f32.vlgmr.msra.gmra.mrb[16].mxu0 %vm600_vm0, %v593_v15  ;;  %1094 = vmatmul.mubr.msk.f32.vlgmr.msra.gmra.mrb[16].mxu1 %vm600_vm0, %v597_v16 }
 0x13d   : > { %1090 = vmatprep.mubr.msk.f32.mxu0 %vm600_vm0, %v594_v17  ;;  %1096 = vmatprep.mubr.msk.f32.mxu1 %vm600_vm0, %v598_v18 }
 0x140   : > { %1091 = vmatmul.mubr.msk.f32.gmra.mrb[18].mxu0 %vm600_vm0, %v595_v19  ;;  %1097 = vmatmul.mubr.msk.f32.gmra.mrb[18].mxu1 %vm600_vm0, %v599_v20 }
 0x20f   : > { %v1089_v25 = vpop.f32.mrb[16].mxu0  ;;  %v1095_v26 = vpop.f32.mrb[16].mxu1 }
 0x210   : > { %v731_v27 = vmax.f32 %v1089_v25, 0.0  ;;  %v691_v28 = vpop.f32.mrb[17].mxu0  ;;  %v711_v29 = vpop.f32.mrb[17].mxu1  ;;  %v735_v45 = vmax.f32 %v1095_v26, 0.0 }
 0x211   : > { %v730_v30 = vmax.f32 %v691_v28, 0.0  ;;  %v734_v40 = vmax.f32 %v711_v29, 0.0 }
 0x212   : > { %v787_v31 = vmul.f32 %v754_v23, %v731_v27  ;;  %v791_v54 = vmul.f32 %v774_v44, %v735_v45 }
 0x213   : > { %v786_v32 = vmul.f32 %v749_v21, %v730_v30  ;;  %v1092_v33 = vpop.f32.mrb[18].mxu0  ;;  %v1098_v34 = vpop.f32.mrb[18].mxu1  ;;  %v790_v48 = vmul.f32 %v769_v42, %v734_v40 }
 0x214   : > { %v796_v35 = vsel %vm794_vm1, %v787_v31, 0.0  ;;  %v733_v36 = vmax.f32 %v1092_v33, 0.0  ;;  %v701_v37 = vpop.f32.mrb[19].mxu0  ;;  %v721_v38 = vpop.f32.mrb[19].mxu1  ;;  %v737_v53 = vmax.f32 %v1098_v34, 0.0  ;;  %v804_v61 = vsel %vm794_vm1, %v791_v54, 0.0 }
 0x215   : > { %v795_v39 = vsel %vm794_vm1, %v786_v32, 0.0  ;;  %v732_v41 = vmax.f32 %v701_v37, 0.0  ;;  %v736_v50 = vmax.f32 %v721_v38, 0.0  ;;  %v802_v58 = vsel %vm794_vm1, %v790_v48, 0.0 }
 0x216   : > { %v797_v43 = vadd.f32 %v796_v35, %v795_v39  ;;  %v789_v46 = vmul.f32 %v764_v24, %v733_v36  ;;  %v793_v62 = vmul.f32 %v784_v57, %v737_v53 }
 0x217   : > { %v788_v47 = vmul.f32 %v759_v22, %v732_v41  ;;  %v792_v59 = vmul.f32 %v779_v56, %v736_v50 }
 0x218   : > { %v800_v52 = vsel %vm794_vm1, %v789_v46, 0.0  ;;  %v808_v2 = vsel %vm794_vm1, %v793_v62, 0.0 }
 0x219   : > { %v798_v49 = vsel %vm794_vm1, %v788_v47, 0.0  ;;  %v806_v0 = vsel %vm794_vm1, %v792_v59, 0.0 }
 0x21a   : > { %v799_v51 = vadd.f32 %v798_v49, %v797_v43 }
 0x21c   : > { %v801_v55 = vadd.f32 %v800_v52, %v799_v51 }
 0x21e   : > { %v803_v60 = vadd.f32 %v802_v58, %v801_v55 }
 0x220   : > { %v805_v63 = vadd.f32 %v804_v61, %v803_v60 }
 0x222   : > { %v807_v1 = vadd.f32 %v806_v0, %v805_v63 }
 0x224   : > { %v809_v3 = vadd.f32 %v808_v2, %v807_v1 }
 0x226   : > { %v810_v4 = vrot.slane %v809_v3, 4 }
 0x228   : > { %v811_v5 = vadd.f32 %v810_v4, %v809_v3 }
 0x22a   : > { %v812_v6 = vrot.slane %v811_v5, 2 }
 0x22c   : > { %v813_v7 = vadd.f32 %v812_v6, %v811_v5 }
 0x22e   : > { %v814_v8 = vrot.slane %v813_v7, 1 }
 0x230   : > { %v815_v9 = vadd.f32 %v814_v8, %v813_v7 }
 0x232   : > { %v816_v10 = vmax.f32 %v815_v9, 0.0 }
 0x234   : > { %818 = vst.msk [vmem:[%s261_s8] sm:$0x1] %vm817_vm2, %v816_v10 }
 0x235   : > { %1258 = shalt.err (!%p1255_p5)
}
 0x236   : > { %s1259_s17 = scalar_lea.hbm %s1653_s12, 16  ;;  %s1263_s27 = scalar_lea.hbm %s1705_s5, 32 }
 0x237   : > { %p1260_p6 = scmp.ne.s32.totalorder %s1653_s12, %s1259_s17  ;;  %p1264_p10 = scmp.lt.u32.totalorder %s1653_s12, %s1705_s5 }
 0x238   : > { %p1265_p11 = scmp.lt.u32.totalorder %s1263_s27, %s1259_s17  ;;  %p1267_p13 = scmp.lt.u32.totalorder %s1259_s17, %s1653_s12 }
 0x239   : > { %p1261_p7 = pnand %p1260_p6, %p1397_p4 }
 0x23a   : > { %p1266_p12 = por %p1265_p11, %p1264_p10 }
 0x23b   : > { %p1262_p9 = pneg %p1261_p7 }
 0x23c   : > { %p1268_p0 = por %p1267_p13, %p1266_p12 }
 0x23e   : > { %p1269_p1 = pnand %p1268_p0, %p1262_p9 }
 0x240   : > { %1272 = shalt.err (!%p1269_p1)
}
 0x241   : > { %1187 = dma.vmem_to_hbm [thread:$0]  (%p1397_p4), %s1655_s9, 16, %s1653_s12, %s820_s13  }
 0x242 PF: > { %p1193_p2 = scmp.ge.s32.totalorder %s1323_s23, 2  ;;  %s845_s8 = sand.u32 1, %s1303_s18  }
 0x243   : > { %s846_s10 = scalar_lea.sflag [#allocation3], %s845_s8 }
 0x244   : > { %p1190_p3 = pnand %p1193_p2, %p1404_p8 }
 0x246   : > { %1298 = dma.done.wait (!%p1190_p3), %s846_s10, 16  }
 0x247   : > { %1300 = vsyncadd (!%p1190_p3), %s846_s10, 4294967280  ;;  %s18_s23 = sadd.s32 1, %s1323_s23   ;;  %s1708_s18 = smov %s1307_s19 }
 0x248   : > { %p15_p5 = scmp.ge.s32.totalorder %s18_s23, 4   ;;  %s1709_s19 = smov %s1311_s20 }
 0x249   : > { %s1710_s20 = smov %s1410_s6  ;;  %s1711_s21 = smov %s1319_s22 }
 0x24a   : > { %s1712_s22 = smov %s1714_s26  ;;  %17 = sbr.rel (!%p15_p5) target bundleno = 4 (0x4), region = 78 }
 0x251   :  { %850 = vsyncpa [#allocation3], 1 }
 0x252   :  { %852 = vsyncpa [#allocation3 + $0x1], 1 }

</bundles_post_ra>
